<compile_context>
chip_gen: v5e
topology: v5e:2x2
jax: 0.10.0
libtpu: 0.0.40
codegen_flags: <defaults>
</compile_context>

<pallas_src>
import jax
import jax.numpy as jnp
from jax import lax
from jax.experimental import pallas as pl
from jax.experimental.pallas import tpu as pltpu


# ----------------------------------------------------------------------------- kernels
def _conv_stats_kernel(xp_ref, wmat_ref, conv_ref, part_ref):
    # xp_ref:   (1, H+2, (W+2)*Cin)  bf16  one zero-padded image, W & Cin folded on lanes
    # wmat_ref: (3, (W+2)*Cin, W*Cp) bf16  banded weight, one slab per vertical tap kh
    # conv_ref: (1, H, W*Cp)         f32   conv output ((w, cout) interleaved on lanes)
    # part_ref: (1, 2, W*Cp)         f32   per-tile [sum, sum-of-squares] over rows
    H = conv_ref.shape[1]

    # 3 accumulated MXU matmuls (static unroll) -- bf16 operands, f32 accumulation.
    acc = jnp.dot(xp_ref[0, 0:H, :], wmat_ref[0], preferred_element_type=jnp.float32)
    for kh in (1, 2):
        acc = acc + jnp.dot(xp_ref[0, kh:kh + H, :], wmat_ref[kh],
                            preferred_element_type=jnp.float32)
    conv_ref[0] = acc

    # Per-tile BN partials (row reductions ride the XLU slot); variance is later
    # derived from sum / sum-of-squares, so no centered temporaries are kept.
    s1 = jnp.sum(acc, axis=0, keepdims=True)            # (1, W*Cp)
    s2 = jnp.sum(acc * acc, axis=0, keepdims=True)      # (1, W*Cp)
    part_ref[0] = jnp.concatenate([s1, s2], axis=0)     # (2, W*Cp)


def _bn_relu_kernel(conv_ref, scale_ref, shift_ref, o_ref):
    # conv_ref / o_ref: (TILE_R, W*Cp) f32 ; scale/shift: (1, W*Cp) f32 (lane-tiled)
    o_ref[...] = jnp.maximum(conv_ref[...] * scale_ref[...] + shift_ref[...], 0.0)


# ----------------------------------------------------------------------------- wrapper
def _pick_cout_pad(cout, w):
    """Smallest Cout_pad >= Cout such that W*Cout_pad is a multiple of 128 (lane-dense)."""
    for cp in range(cout, cout + 129):
        if (w * cp) % 128 == 0:
            return cp
    return cout


def conv3x3_bn_relu(x_nchw, weight_oihw, gamma, beta, *, eps=1e-5):
    """Forward of Conv3x3: conv(3x3, pad=1, no bias) -> BN (batch stats) -> ReLU."""
    N, Cin, H, W = x_nchw.shape
    Cout = weight_oihw.shape[0]
    Cp = _pick_cout_pad(Cout, W)          # 8 for (W=16, Cout=8) -> lane dim exactly 128
    WC = W * Cp                           # output lane width
    KW = (W + 2) * Cin                    # input lane width (padded width x channels)

    # ---- layout-only glue (single pass over the small activation) ----
    x = jnp.transpose(x_nchw, (0, 2, 3, 1))                      # NHWC
    xp = jnp.pad(x, ((0, 0), (1, 1), (1, 1), (0, 0)))            # pad=1
    xp = xp.reshape(N, H + 2, KW).astype(jnp.bfloat16)           # (N, H+2, (W+2)*Cin)

    # Banded weight: B[kh][(w+kw)*Cin + c, w*Cp + co] = weight[co, c, kh, kw].
    # Weight-only expansion (tiny); the activation is never duplicated in HBM.
    wt = jnp.transpose(weight_oihw, (2, 3, 1, 0)).astype(jnp.float32)   # (3,3,Cin,Cout)
    eye_w = jnp.eye(W, dtype=jnp.float32)
    slabs = []
    for kh in range(3):
        acc = jnp.zeros((KW, WC), jnp.float32)
        for kw in range(3):
            blk = jnp.pad(wt[kh, kw], ((0, 0), (0, Cp - Cout)))         # (Cin, Cp)
            bd = jnp.kron(eye_w, blk)                                   # (W*Cin, W*Cp)
            acc = acc + jnp.pad(bd, ((kw * Cin, (2 - kw) * Cin), (0, 0)))
        slabs.append(acc)
    wmat = jnp.stack(slabs, 0).astype(jnp.bfloat16)                     # (3, KW, WC)

    cparams = pltpu.CompilerParams(
        dimension_semantics=("parallel",),
        vmem_limit_bytes=32 * 1024 * 1024,
    )

    # ---- pass 1: conv + per-tile BN partials (one image tile per grid step) ----
    conv_out, partials = pl.pallas_call(
        _conv_stats_kernel,
        out_shape=(jax.ShapeDtypeStruct((N, H, WC), jnp.float32),
                   jax.ShapeDtypeStruct((N, 2, WC), jnp.float32)),
        grid=(N,),
        in_specs=[
            pl.BlockSpec((1, H + 2, KW), lambda n: (n, 0, 0)),
            pl.BlockSpec((3, KW, WC), lambda n: (0, 0, 0)),   # resident weight slabs
        ],
        out_specs=(
            pl.BlockSpec((1, H, WC), lambda n: (n, 0, 0)),
            pl.BlockSpec((1, 2, WC), lambda n: (n, 0, 0)),
        ),
        compiler_params=cparams,
    )(xp, wmat)

    # ---- tiny JAX glue: fold partials into global batch statistics (Cout-sized) ----
    M = N * H * W
    s = jnp.sum(partials, axis=0).reshape(2, W, Cp)[:, :, :Cout]        # (2, W, Cout)
    sums, sumsq = jnp.sum(s[0], axis=0), jnp.sum(s[1], axis=0)          # (Cout,)
    mean = sums / M
    var = jnp.maximum(sumsq / M - mean * mean, 0.0)                     # biased (PyTorch)
    inv_std = lax.rsqrt(var + eps)
    scale = gamma.astype(jnp.float32) * inv_std
    shift = beta.astype(jnp.float32) - mean * scale
    scale_l = jnp.tile(jnp.pad(scale, (0, Cp - Cout)), W).reshape(1, WC)
    shift_l = jnp.tile(jnp.pad(shift, (0, Cp - Cout)), W).reshape(1, WC)

    # ---- pass 2: tiled normalize + affine + ReLU (elementwise, lane-dense) ----
    R = N * H
    TILE_R = R if R <= 512 else 512
    out_flat = pl.pallas_call(
        _bn_relu_kernel,
        out_shape=jax.ShapeDtypeStruct((R, WC), jnp.float32),
        grid=(pl.cdiv(R, TILE_R),),
        in_specs=[
            pl.BlockSpec((TILE_R, WC), lambda i: (i, 0)),
            pl.BlockSpec((1, WC), lambda i: (0, 0)),
            pl.BlockSpec((1, WC), lambda i: (0, 0)),
        ],
        out_specs=pl.BlockSpec((TILE_R, WC), lambda i: (i, 0)),
        compiler_params=cparams,
    )(conv_out.reshape(R, WC), scale_l, shift_l)

    out = out_flat.reshape(N, H, W, Cp)[:, :, :, :Cout]
    return jnp.transpose(out, (0, 3, 1, 2))                             # back to NCHW


# ----------------------------------------------------------------------------- reference
def _reference(x_nchw, weight_oihw, gamma, beta):
    conv = lax.conv_general_dilated(
        x_nchw.astype(jnp.float32), weight_oihw.astype(jnp.float32),
        window_strides=(1, 1), padding=((1, 1), (1, 1)),
        dimension_numbers=("NCHW", "OIHW", "NCHW"))
    mean = conv.mean(axis=(0, 2, 3), keepdims=True)
    var = ((conv - mean) ** 2).mean(axis=(0, 2, 3), keepdims=True)
    y = (conv - mean) / jnp.sqrt(var + 1e-5)
    y = y * gamma.reshape(1, -1, 1, 1) + beta.reshape(1, -1, 1, 1)
    return jnp.maximum(y, 0.0)


if __name__ == "__main__":
    # Small shapes consistent with the module: NCHW input, in_channels=4, out_channels=8.
    N, Cin, Cout, H, W = 2, 4, 8, 16, 16

    key = jax.random.PRNGKey(0)
    kx, kw = jax.random.split(key)
    x = jax.random.normal(kx, (N, Cin, H, W), dtype=jnp.float32)
    weight = 0.1 * jax.random.normal(kw, (Cout, Cin, 3, 3), dtype=jnp.float32)
    gamma = jnp.ones((Cout,), jnp.float32)
    beta = jnp.zeros((Cout,), jnp.float32)

    out = conv3x3_bn_relu(x, weight, gamma, beta)
    out = jax.block_until_ready(out)

    ref = _reference(x, weight, gamma, beta)
    assert out.shape == (N, Cout, H, W)
    # bf16 MXU operands -> slightly looser tolerance than pure-f32.
    assert jnp.allclose(out, ref, atol=2e-2, rtol=2e-2)

    print("KERNEL_OK")
</pallas_src>

<mosaic_0001>
module attributes {stable_mosaic.version = 11 : i64} {
  func.func @_conv_stats_kernel(%arg0: i32, %arg1: memref<1x18x72xbf16, #tpu.memory_space<vmem>>, %arg2: memref<3x72x128xbf16, #tpu.memory_space<vmem>>, %arg3: memref<1x16x128xf32, #tpu.memory_space<vmem>>, %arg4: memref<1x2x128xf32, #tpu.memory_space<vmem>>) attributes {dimension_semantics = [#tpu.dimension_semantics<parallel>], iteration_bounds = array<i64: 2>, scalar_prefetch = 0 : i64, scratch_operands = 0 : i64, tpu.core_type = #tpu.core_type<tc>, window_params = [{transform_indices = @transform_0, window_bounds = array<i64: 1, 18, 72>}, {pipeline_mode = #tpu.pipeline_mode<synchronous>, transform_indices = @transform_1, window_bounds = array<i64: 3, 72, 128>}, {transform_indices = @transform_2, window_bounds = array<i64: 1, 16, 128>}, {transform_indices = @transform_3, window_bounds = array<i64: 1, 2, 128>}]} {
    %c0 = arith.constant 0 : index
    %c0_0 = arith.constant 0 : index
    %c0_1 = arith.constant 0 : index
    %0 = vector.load %arg1[%c0, %c0_0, %c0_1] : memref<1x18x72xbf16, #tpu.memory_space<vmem>>, vector<1x16x72xbf16>
    %1 = vector.shape_cast %0 : vector<1x16x72xbf16> to vector<16x72xbf16>
    %c0_2 = arith.constant 0 : index
    %c0_3 = arith.constant 0 : index
    %c0_4 = arith.constant 0 : index
    %2 = vector.load %arg2[%c0_2, %c0_3, %c0_4] : memref<3x72x128xbf16, #tpu.memory_space<vmem>>, vector<1x72x128xbf16>
    %3 = vector.shape_cast %2 : vector<1x72x128xbf16> to vector<72x128xbf16>
    %cst = arith.constant dense<0.000000e+00> : vector<16x128xf32>
    %4 = tpu.matmul %1, %3, %cst {dimension_numbers = #tpu.dot_dimension_numbers<[1], [0], [0], [1], [0, 0, 1, 1], [], []>} : vector<16x72xbf16>, vector<72x128xbf16>, vector<16x128xf32> -> vector<16x128xf32>
    %c0_5 = arith.constant 0 : index
    %c1 = arith.constant 1 : index
    %c0_6 = arith.constant 0 : index
    %5 = vector.load %arg1[%c0_5, %c1, %c0_6] : memref<1x18x72xbf16, #tpu.memory_space<vmem>>, vector<1x16x72xbf16>
    %6 = vector.shape_cast %5 : vector<1x16x72xbf16> to vector<16x72xbf16>
    %c1_7 = arith.constant 1 : index
    %c0_8 = arith.constant 0 : index
    %c0_9 = arith.constant 0 : index
    %7 = vector.load %arg2[%c1_7, %c0_8, %c0_9] : memref<3x72x128xbf16, #tpu.memory_space<vmem>>, vector<1x72x128xbf16>
    %8 = vector.shape_cast %7 : vector<1x72x128xbf16> to vector<72x128xbf16>
    %cst_10 = arith.constant dense<0.000000e+00> : vector<16x128xf32>
    %9 = tpu.matmul %6, %8, %cst_10 {dimension_numbers = #tpu.dot_dimension_numbers<[1], [0], [0], [1], [0, 0, 1, 1], [], []>} : vector<16x72xbf16>, vector<72x128xbf16>, vector<16x128xf32> -> vector<16x128xf32>
    %10 = arith.addf %4, %9 : vector<16x128xf32>
    %c0_11 = arith.constant 0 : index
    %c2 = arith.constant 2 : index
    %c0_12 = arith.constant 0 : index
    %11 = vector.load %arg1[%c0_11, %c2, %c0_12] : memref<1x18x72xbf16, #tpu.memory_space<vmem>>, vector<1x16x72xbf16>
    %12 = vector.shape_cast %11 : vector<1x16x72xbf16> to vector<16x72xbf16>
    %c2_13 = arith.constant 2 : index
    %c0_14 = arith.constant 0 : index
    %c0_15 = arith.constant 0 : index
    %13 = vector.load %arg2[%c2_13, %c0_14, %c0_15] : memref<3x72x128xbf16, #tpu.memory_space<vmem>>, vector<1x72x128xbf16>
    %14 = vector.shape_cast %13 : vector<1x72x128xbf16> to vector<72x128xbf16>
    %cst_16 = arith.constant dense<0.000000e+00> : vector<16x128xf32>
    %15 = tpu.matmul %12, %14, %cst_16 {dimension_numbers = #tpu.dot_dimension_numbers<[1], [0], [0], [1], [0, 0, 1, 1], [], []>} : vector<16x72xbf16>, vector<72x128xbf16>, vector<16x128xf32> -> vector<16x128xf32>
    %16 = arith.addf %10, %15 : vector<16x128xf32>
    %c0_17 = arith.constant 0 : index
    %c0_18 = arith.constant 0 : index
    %c0_19 = arith.constant 0 : index
    %17 = vector.load %arg3[%c0_17, %c0_18, %c0_19] : memref<1x16x128xf32, #tpu.memory_space<vmem>>, vector<1x16x128xf32>
    %18 = vector.shape_cast %17 : vector<1x16x128xf32> to vector<16x128xf32>
    %19 = vector.shape_cast %16 : vector<16x128xf32> to vector<1x16x128xf32>
    tpu.vector_store %arg3[%c0_17, %c0_18, %c0_19], %19 {strides = array<i32>} : memref<1x16x128xf32, #tpu.memory_space<vmem>>, vector<1x16x128xf32>,
    %cst_20 = arith.constant dense<0.000000e+00> : vector<128xf32>
    %20 = vector.multi_reduction <add>, %16, %cst_20 [0] : vector<16x128xf32> to vector<128xf32>
    %21 = vector.shape_cast %20 : vector<128xf32> to vector<1x128xf32>
    %22 = arith.mulf %16, %16 : vector<16x128xf32>
    %cst_21 = arith.constant dense<0.000000e+00> : vector<128xf32>
    %23 = vector.multi_reduction <add>, %22, %cst_21 [0] : vector<16x128xf32> to vector<128xf32>
    %24 = vector.shape_cast %23 : vector<128xf32> to vector<1x128xf32>
    %25 = tpu.concatenate %21, %24 in 0 : vector<1x128xf32>, vector<1x128xf32> -> vector<2x128xf32>
    %c0_22 = arith.constant 0 : index
    %c0_23 = arith.constant 0 : index
    %c0_24 = arith.constant 0 : index
    %26 = vector.load %arg4[%c0_22, %c0_23, %c0_24] : memref<1x2x128xf32, #tpu.memory_space<vmem>>, vector<1x2x128xf32>
    %27 = vector.shape_cast %26 : vector<1x2x128xf32> to vector<2x128xf32>
    %28 = vector.shape_cast %25 : vector<2x128xf32> to vector<1x2x128xf32>
    tpu.vector_store %arg4[%c0_22, %c0_23, %c0_24], %28 {strides = array<i32>} : memref<1x2x128xf32, #tpu.memory_space<vmem>>, vector<1x2x128xf32>,
    return
  }
  func.func @transform_0(%arg0: i32) -> (i32, i32, i32) {
    %c0_i32 = arith.constant 0 : i32
    %c0_i32_0 = arith.constant 0 : i32
    %c0_i32_1 = arith.constant 0 : i32
    return %arg0, %c0_i32, %c0_i32_0 : i32, i32, i32
  }
  func.func @transform_1(%arg0: i32) -> (i32, i32, i32) {
    %c0_i32 = arith.constant 0 : i32
    %c0_i32_0 = arith.constant 0 : i32
    %c0_i32_1 = arith.constant 0 : i32
    %c0_i32_2 = arith.constant 0 : i32
    return %c0_i32, %c0_i32_0, %c0_i32_1 : i32, i32, i32
  }
  func.func @transform_2(%arg0: i32) -> (i32, i32, i32) {
    %c0_i32 = arith.constant 0 : i32
    %c0_i32_0 = arith.constant 0 : i32
    %c0_i32_1 = arith.constant 0 : i32
    return %arg0, %c0_i32, %c0_i32_0 : i32, i32, i32
  }
  func.func @transform_3(%arg0: i32) -> (i32, i32, i32) {
    %c0_i32 = arith.constant 0 : i32
    %c0_i32_0 = arith.constant 0 : i32
    %c0_i32_1 = arith.constant 0 : i32
    return %arg0, %c0_i32, %c0_i32_0 : i32, i32, i32
  }
}

</mosaic_0001>

<bundles_post_ra>
// kernel: tpu_custom_call.1
= control target key start
LH: loop header
LB: loop body
LE: loop exit
PB: predicated region body
PF: predicated region fallthrough
CT: control target
= control target key end

     0   :  { %9 = vsyncpa [#allocation3], 0  ;;  %s983_s0 = inlined_call_operand.vmem [shape: bf16[2,18,72], index: 0, kind: input, shape index: {}]   ;;  %s984_s1 = inlined_call_operand.hbm [shape: bf16[3,72,128], index: 1, kind: input, shape index: {}]   ;;  %s985_s2 = inlined_call_operand.hbm [shape: f32[2,16,128], index: 2, kind: output, shape index: {0}]   ;;  %s986_s3 = inlined_call_operand.hbm [shape: f32[2,2,128], index: 3, kind: output, shape index: {1}]  }
   0x1   :  { %10 = vsyncpa [#allocation4], 0 }
   0x2   :  { %12 = vsyncpa [#allocation4 + $0x1], 0 }
   0x3   :  { %13 = vsyncpa [#allocation7], 0 }
   0x4   :  { %15 = vsyncpa [#allocation7 + $0x1], 0  ;;  %s868_s12 = smov 0   ;;  %s870_s13 = smov 0  }
   0x5   :  { %s872_s14 = smov 0   ;;  %s874_s15 = smov 0  }
   0x6 LB: > { %s889_s16 = sadd.s32 4294967295, %s841_s15   ;;  %s566_s17 = sadd.s32 4294967294, %s841_s15   ;;  %s841_s15 = sphi %s874_s15, %s992_s15   ;;  %s837_s14 = sphi %s872_s14, %s991_s14   ;;  %s833_s13 = sphi %s870_s13, %s990_s13   ;;  %s829_s12 = sphi %s868_s12, %s989_s12  }
   0x7   : > { %s893_s18 = sadd.s32 1, %s841_s15   ;;  %s75_s19 = sadd.s32 1, %s837_s14 }
   0x8   : > { %s72_s20 = ssub.s32 %s841_s15, %s893_s18  ;;  %p85_p0 = scmp.ne.s32.totalorder %s837_s14, %s833_s13 }
   0x9   : > { %p73_p1 = scmp.eq.s32.totalorder %s72_s20, 0  ;;  %p86_p2 = scmp.eq.s32.totalorder %s889_s16, 1 }
   0xa   : > { %p91_p3 = scmp.ne.s32.totalorder %s833_s13, %s829_s12  ;;  %p92_p4 = scmp.eq.s32.totalorder %s566_s17, 1 }
   0xb   : > { %s904_s21 = scalar_select %p73_p1, %s837_s14, %s75_s19  }
   0xc   : > { %p906_p5 = por %p86_p2, %p85_p0  ;;  %p910_p6 = por %p92_p4, %p91_p3 }
   0xd   : > { %p567_p7 = scmp.ge.s32.totalorder %s841_s15, 1  ;;  %p125_p8 = scmp.lt.s32.totalorder %s841_s15, 3 }
   0xe   : > { %p673_p9 = scmp.eq.s32.totalorder %s889_s16, 0  ;;  %s136_s26 = sshll.u32 %s984_s1, 4  ;;  %s137_s26 = int_to_ptr.hbm [resolvable:$true] %s136_s26 }
   0xf   : > { %p126_p10 = pnand %p567_p7, %p125_p8  ;;  %s843_s27 = smov [#allocation2]  }
  0x10   : > { %s138_s28 = sshll.u32 %s843_s27, 4  ;;  %s844_s29 = smov 64   ;;  %s139_s28 = int_to_ptr.vmem [resolvable:$true] %s138_s28 }
  0x11   : > { %p662_p11 = pneg %p126_p10  ;;  %s845_s30 = smov 4  }
  0x12   : > { %162 = sbr.rel (%p126_p10) target bundleno = 212 (0xd4), region = 28 }
  0x13   : > { %p663_p12 = pnand %p673_p9, %p662_p11 }
  0x15   : > { %665 = dma.hbm_to_vmem [thread:$0]  (!%p663_p12), %s137_s26, 1728, %s139_s28, [#allocation3], %s844_s29, %s844_s29, %s845_s30  }
  0x17   : > { %816 = dma.done.wait (%p673_p9), [#allocation3], 1728  }
  0x18   : > { %818 = vsyncadd (%p673_p9), [#allocation3], 4294965568  ;;  %p192_p13 = scmp.lt.s32.totalorder %s889_s16, 1  ;;  %v219_v0 = vld [vmem:[#allocation2 + $0x44] sm:$0xf]  ;;  %vm272_vm0 = vcmask 1043456  }
  0x19   : > { %v208_v1 = vld [vmem:[#allocation2 + $0x20] sm:$0xf]  ;;  %v346_v2 = vld [vmem:[#allocation2 + $0x68] sm:$0xf]  ;;  %v258_v3 = vunpack.c.l.b16 %v219_v0  ;;  %v636_v14 = vld [vmem:[#allocation2 + $0x18] sm:$0xff]  ;;  %vm350_vm2 = vcmask 1046528  }
  0x1a   : > { %s193_s4 = scalar_select %p192_p13, %s889_s16, 1  ;;  %v307_v4 = vunpack.c.l.b16 %v208_v1  ;;  %v371_v5 = vunpack.c.l.b16 %v346_v2  ;;  %v640_v13 = vld [vmem:[#allocation2 + $0x3c] sm:$0xff]  ;;  %v639_v18 = vld [vmem:[#allocation2 + $0x34] sm:$0xff]  ;;  %v638_v25 = vld [vmem:[#allocation2 + $0x2c] sm:$0xff]  ;;  %vm228_vm1 = vsmask.f32 7424 }
  0x1b   : > { %v263_v6 = vpack.c.b16 %v258_v3, %v258_v3  ;;  %v644_v16 = vld [vmem:[#allocation2 + $0x60] sm:$0xff]  ;;  %v635_v19 = vld [vmem:[#allocation2 + $0x10] sm:$0xff]  ;;  %v643_v22 = vld [vmem:[#allocation2 + $0x58] sm:$0xff]  ;;  %vm268_vm3 = vcmask 588800   ;;  %s932_s9 = sand.u32 1, %s833_s13   ;;  %s645_s11 = sshll.u32 %s889_s16, 4 }
  0x1c   : > { %s653_s5 = smul.u32 12, %s193_s4  ;;  %v312_v7 = vpack.c.b16 %v307_v4, %v307_v4  ;;  %v376_v8 = vpack.c.b16 %v371_v5, %v371_v5  ;;  %v634_v26 = vld [vmem:[#allocation2 + $0x8] sm:$0xff]  ;;  %v642_v30 = vld [vmem:[#allocation2 + $0x50] sm:$0xff]  ;;  %v633_v33 = vld [vmem:[#allocation2] sm:$0xff]  ;;  %s572_s10 = sshll.u32 %s932_s9, 4 }
  0x1d   : > { %v274_v9 = vsel %vm272_vm0, %v263_v6, 0  ;;  %v637_v32 = vld [vmem:[#allocation2 + $0x24] sm:$0xff]  ;;  %s184_s17 = scalar_lea.vmem [#allocation5], %s572_s10  ;;  %s441_s24 = scalar_lea.hbm %s985_s2, %s645_s11 }
  0x1e   : > { %s196_s8 = scalar_lea.vmem %s983_s0, %s653_s5  ;;  %v320_v10 = vsel %vm272_vm0, %v312_v7, 0  ;;  %v385_v11 = vsel %vm272_vm0, %v376_v8, 0  ;;  %279 = vmatpush.bf16.msra.mxu0 %v274_v9  ;;  %v641_v36 = vld [vmem:[#allocation2 + $0x48] sm:$0xff]  ;;  %s442_s25 = sshll.u32 %s184_s17, 4  ;;  %s443_s25 = int_to_ptr.vmem [resolvable:$true] %s442_s25 }
  0x1f   : > { %v209_v12 = vld [vmem:[%s196_s8 + $0x8] sm:$0x1]  ;;  %325 = vmatpush.bf16.msra.mxu1 %v320_v10  ;;  %390 = vmatpush.bf16.msra.mxu2 %v385_v11  ;;  %v647_v17 = vld [vmem:[%s196_s8] sm:$0xff]   ;;  %s444_s26 = sshll.u32 %s441_s24, 4  ;;  %s425_s27 = scalar_lea.sflag [#allocation4], %s932_s9  ;;  %s445_s26 = int_to_ptr.hbm [resolvable:$true] %s444_s26 }
  0x20   : > { %v225_v15 = vunpack.c.l.b16 %v209_v12  ;;  %v232_v21 = vshll.u32 %v647_v17, 16  ;;  %v650_v23 = vld [vmem:[%s196_s8] sm:$0xf0]  ;;  %v651_v24 = vld [vmem:[%s196_s8] sm:$0xe]  ;;  %v230_v27 = vshrl.u32 %v647_v17, 16 }
  0x21   : > { %v652_v31 = vor.u32 %v651_v24, %v650_v23  ;;  %s757_s28 = sshra.s32 %s445_s26, 4  ;;  %s763_s5 = scalar_lea.hbm %s985_s2, 32  ;;  %s758_s28 = int_to_ptr.hbm [resolvable:$true] %s757_s28 }
  0x22   : > { %280 = vmatpush.bf16.msra.mxu0 %v640_v13  ;;  %v227_v20 = vpack.c.b16 %v225_v15, %v225_v15  ;;  %v234_v28 = vrot.slane %v232_v21, 1  ;;  %s759_s29 = scalar_lea.hbm %s758_s28, 16  ;;  %p764_p3 = scmp.lt.s32.totalorder %s758_s28, %s985_s2 }
  0x23   : > { %326 = vmatpush.bf16.msra.mxu1 %v636_v14  ;;  %391 = vmatpush.bf16.msra.mxu2 %v644_v16  ;;  %v351_v37 = vrot.slane %v652_v31, 1  ;;  %p760_p0 = scmp.ne.s32.totalorder %s758_s28, %s759_s29  ;;  %p765_p4 = scmp.lt.s32.totalorder %s763_s5, %s759_s29 }
  0x24   : > { %v237_v29 = vshll.u32 %v227_v20, 16  ;;  %v235_v34 = vor.u32 %v234_v28, %v230_v27  ;;  %v352_v38 = vrot.slane %v227_v20, 1 }
  0x25   : > { %p761_p1 = pnand %p760_p0, %p906_p5  ;;  %p766_p7 = por %p765_p4, %p764_p3 }
  0x26   : > { %281 = vmatpush.bf16.msra.mxu0 %v639_v18  ;;  %v239_v35 = vrot.slane %v237_v29, 1  ;;  %v353_v40 = vsel %vm350_vm2, %v351_v37, %v352_v38 }
  0x27   : > { %327 = vmatpush.bf16.msra.mxu1 %v635_v19  ;;  %392 = vmatpush.bf16.msra.mxu2 %v643_v22  ;;  %p762_p2 = pneg %p761_p1 }
  0x28   : > { %v240_v39 = vsel %vm228_vm1, %v235_v34, %v239_v35 }
  0x29   : > { %p767_p8 = pnand %p766_p7, %p762_p2 }
  0x2a   : > { %282 = vmatpush.bf16.msra.mxu0 %v638_v25 }
  0x2b   : > { %328 = vmatpush.bf16.msra.mxu1 %v634_v26  ;;  %393 = vmatpush.bf16.msra.mxu2 %v642_v30 }
  0x2e   : > { %283 = vmatpush.bf16.msra.mxu0 %v637_v32 }
  0x2f   : > { %329 = vmatpush.bf16.msra.mxu1 %v633_v33  ;;  %394 = vmatpush.bf16.msra.mxu2 %v641_v36 }
  0x31   : > { %591 = vmatmul.msk.bf16.vlgmr.msra.gmra.mxu0 %vm268_vm3, %v240_v39 }
  0x32   : > { %608 = vmatmul.msk.bf16.vlgmr.msra.gmra.mxu1 %vm268_vm3, %v647_v17  ;;  %625 = vmatmul.msk.bf16.vlgmr.msra.gmra.mxu2 %vm268_vm3, %v353_v40 }
  0xae   : > { %v285_v41 = vpop.f32.mrf.mxu0 }
  0xaf   : > { %v331_v42 = vpop.f32.mrf.mxu1 }
  0xb0   : > { %v332_v43 = vadd.f32 %v331_v42, %v285_v41 }
  0xb5   : > { %v396_v44 = vpop.f32.mrf.mxu2 }
  0xb6   : > { %v401_v45 = vadd.f32 %v396_v44, %v332_v43  ;;  %v287_v46 = vpop.f32.mrf.mxu0 }
  0xb7   : > { %v333_v47 = vpop.f32.mrf.mxu1 }
  0xb8   : > { %403 = vst [vmem:[%s184_s17] sm:$0xff] %v401_v45  ;;  %v334_v48 = vadd.f32 %v333_v47, %v287_v46  ;;  %v412_v51 = vmul.f32 %v401_v45, %v401_v45 }
  0xbd   : > { %v398_v49 = vpop.f32.mrf.mxu2 }
  0xbe   : > { %v402_v50 = vadd.f32 %v398_v49, %v334_v48 }
  0xc0   : > { %404 = vst [vmem:[%s184_s17 + $0x8] sm:$0xff] %v402_v50  ;;  %v405_v52 = vadd.f32 %v402_v50, %v401_v45  ;;  %v413_v53 = vmul.f32 %v402_v50, %v402_v50 }
  0xc1   : > { %770 = shalt.err (!%p767_p8)
}
  0xc2   : > { %s846_s8 = smov 128   ;;  %s847_s10 = smov 8   ;;  %v406_v54 = vrot.slane %v405_v52, 4  ;;  %v414_v55 = vadd.f32 %v413_v53, %v412_v51  ;;  %vm421_vm4 = vcmask 1040384  }
  0xc3   : > { %658 = dma.vmem_to_hbm [thread:$0]  (%p906_p5), %s443_s25, 256, %s445_s26, %s425_s27, %s846_s8, %s846_s8, %s847_s10  }
  0xc4   : > { %v407_v56 = vadd.f32 %v406_v54, %v405_v52  ;;  %v415_v57 = vrot.slane %v414_v55, 4  ;;  %s573_s11 = sshll.u32 %s932_s9, 1  ;;  %s630_s17 = sshll.u32 %s889_s16, 1 }
  0xc5   : > { %s457_s24 = scalar_lea.hbm %s986_s3, %s630_s17  ;;  %s191_s25 = scalar_lea.vmem [#allocation6], %s573_s11 }
  0xc6   : > { %v408_v58 = vrot.slane %v407_v56, 2  ;;  %v416_v59 = vadd.f32 %v415_v57, %v414_v55  ;;  %s459_s26 = sshll.u32 %s191_s25, 4  ;;  %s461_s27 = sshll.u32 %s457_s24, 4  ;;  %s460_s26 = int_to_ptr.vmem [resolvable:$true] %s459_s26  ;;  %s462_s27 = int_to_ptr.hbm [resolvable:$true] %s461_s27 }
  0xc7   : > { %s430_s16 = scalar_lea.sflag [#allocation7], %s932_s9  ;;  %s785_s28 = sshra.s32 %s462_s27, 4  ;;  %s786_s28 = int_to_ptr.hbm [resolvable:$true] %s785_s28 }
  0xc8   : > { %v409_v60 = vadd.f32 %v408_v58, %v407_v56  ;;  %v417_v61 = vrot.slane %v416_v59, 2  ;;  %s787_s29 = scalar_lea.hbm %s786_s28, 2  ;;  %s791_s5 = scalar_lea.hbm %s986_s3, 4 }
  0xc9   : > { %p788_p9 = scmp.ne.s32.totalorder %s786_s28, %s787_s29  ;;  %p792_p12 = scmp.lt.s32.totalorder %s786_s28, %s986_s3 }
  0xca   : > { %v410_v62 = vrot.slane %v409_v60, 1  ;;  %v418_v63 = vadd.f32 %v417_v61, %v416_v59  ;;  %p793_p13 = scmp.lt.s32.totalorder %s791_s5, %s787_s29 }
  0xcb   : > { %p789_p10 = pnand %p788_p9, %p906_p5 }
  0xcc   : > { %v419_v0 = vrot.slane %v418_v63, 1  ;;  %v411_v1 = vadd.f32 %v410_v62, %v409_v60  ;;  %p794_p0 = por %p793_p13, %p792_p12 }
  0xcd   : > { %p790_p11 = pneg %p789_p10 }
  0xce   : > { %v420_v2 = vadd.f32 %v419_v0, %v418_v63 }
  0xcf   : > { %p795_p1 = pnand %p794_p0, %p790_p11 }
  0xd0   : > { %v422_v3 = vsel %vm421_vm4, %v411_v1, %v420_v2 }
  0xd1   : > { %423 = vst [vmem:[%s191_s25] sm:$0x3] %v422_v3 }
  0xd2   : > { %798 = shalt.err (!%p795_p1)
}
  0xd3   : > { %659 = dma.vmem_to_hbm [thread:$0]  (%p906_p5), %s460_s26, 32, %s462_s27, %s430_s16  }
  0xd4 PF: > { %p675_p2 = scmp.ge.s32.totalorder %s841_s15, 2  ;;  %s473_s9 = sand.u32 1, %s829_s12  }
  0xd5   : > { %s474_s8 = scalar_lea.sflag [#allocation4], %s473_s9 }
  0xd6   : > { %p667_p3 = pnand %p675_p2, %p910_p6 }
  0xd8   : > { %p668_p4 = pneg %p667_p3 }
  0xda   : > { %820 = dma.done.wait (%p668_p4), %s474_s8, 256  }
  0xdb   : > { %822 = vsyncadd (%p668_p4), %s474_s8, 4294967040  ;;  %s484_s10 = scalar_lea.sflag [#allocation7], %s473_s9 }
  0xdc   : > { %824 = dma.done.wait (%p668_p4), %s484_s10, 32  }
  0xdd   : > { %826 = vsyncadd (%p668_p4), %s484_s10, 4294967264  ;;  %p18_p5 = scmp.ge.s32.totalorder %s893_s18, 4   ;;  %s989_s12 = smov %s833_s13 }
  0xde   : > { %s990_s13 = smov %s837_s14  ;;  %s991_s14 = smov %s904_s21 }
  0xdf   : > { %s992_s15 = smov %s893_s18  ;;  %20 = sbr.rel (!%p18_p5) target bundleno = 6 (0x6), region = 87 }
  0xe4   :  { %490 = vsyncpa [#allocation3], 1 }
  0xe5   :  { %492 = vsyncpa [#allocation3 + $0x1], 1 }
  0xe6   :  { %493 = vsyncpa [#allocation4], 1 }
  0xe7   :  { %495 = vsyncpa [#allocation4 + $0x1], 1 }
  0xe8   :  { %496 = vsyncpa [#allocation7], 1 }
  0xe9   :  { %498 = vsyncpa [#allocation7 + $0x1], 1 }

</bundles_post_ra>
